<compile_context>
chip_gen: v5e
topology: v5e:2x2
jax: 0.10.0
libtpu: 0.0.40
codegen_flags: <defaults>
</compile_context>

<pallas_src>
import functools

import jax
import jax.numpy as jnp
from jax import lax
from jax.experimental import pallas as pl
from jax.experimental.pallas import tpu as pltpu

BN_EPS = 1e-5
LANE = 128
SUBLANE = 8


def _mlp_kernel(x_ref, w1_ref, gamma_ref, beta_ref, w2_ref, b2_ref, o_ref, acc_ref,
                *, inv_n):
    """One H-tile: matmul1 -> BN (batch stats, folded FMA) -> ReLU -> partial matmul2."""
    h_idx = pl.program_id(0)

    # ---- Linear 1 (no bias): contract last axes of x (Np, D) and w1 tile (tH, D).
    # bf16 MXU inputs, f32 accumulation. Zero-padded batch rows produce zero rows of h.
    h = lax.dot_general(
        x_ref[...].astype(jnp.bfloat16),
        w1_ref[...].astype(jnp.bfloat16),
        (((1,), (1,)), ((), ())),
        preferred_element_type=jnp.float32,
    )  # (Np, tH), f32

    # ---- BatchNorm1d (training mode: biased variance over the real batch axis).
    # inv_n is 1/N_real (static); zero-padded rows contribute nothing to the sums,
    # so the statistics are exact for the real batch.
    mean = jnp.sum(h, axis=0, keepdims=True) * inv_n                    # (1, tH)
    var = jnp.sum(h * h, axis=0, keepdims=True) * inv_n - mean * mean   # biased variance
    a = gamma_ref[...] * lax.rsqrt(var + BN_EPS)                        # (1, tH)
    b = beta_ref[...] - mean * a
    hn = h * a + b

    # ---- ReLU.
    hr = jnp.maximum(hn, 0.0)

    # ---- Linear 2 partial product for this H tile: contract last axes of
    # hr (Np, tH) and w2 tile (Op, tH) -> (Np, Op); accumulate across H tiles in f32.
    part = lax.dot_general(
        hr.astype(jnp.bfloat16),
        w2_ref[...].astype(jnp.bfloat16),
        (((1,), (1,)), ((), ())),
        preferred_element_type=jnp.float32,
    )

    @pl.when(h_idx == 0)
    def _():
        # Seed the accumulator with the (broadcast) output bias: removes the
        # separate bias add from the epilogue.
        acc_ref[...] = jnp.broadcast_to(b2_ref[...], acc_ref.shape)

    acc_ref[...] += part

    @pl.when(h_idx == pl.num_programs(0) - 1)
    def _():
        o_ref[...] = acc_ref[...].astype(o_ref.dtype)


def _pick_tile_h(H):
    # Prefer 256/512-aligned tiles (v6e/v7x MXU) that also fit v5e's 128 granularity.
    for t in (512, 256, 128):
        if H % t == 0:
            return t
    return H  # fall back to the full hidden dim


def _round_up(x, m):
    return ((x + m - 1) // m) * m


@functools.partial(jax.jit, static_argnames=("tile_h",))
def mlp_forward(x, w1, gamma, beta, w2, b2, *, tile_h=None):
    """x: (N, D); w1: (H, D); gamma, beta: (H,); w2: (O, H); b2: (O,)."""
    N, D = x.shape
    H, D2 = w1.shape
    O, H2 = w2.shape
    assert D2 == D and H2 == H

    if tile_h is None:
        tile_h = _pick_tile_h(H)
    assert H % tile_h == 0, "tile_h must divide H"
    n_h = H // tile_h

    # Sublane-align the batch (zero rows don't affect BN stats; sliced off below).
    Np = _round_up(max(N, SUBLANE), SUBLANE)
    xp = jnp.pad(x, ((0, Np - N), (0, 0))) if Np != N else x

    # Lane-dense output: pad O up to a multiple of 128 with zero output features so
    # stores are full-width (unmasked vst); padding is sliced off after the call.
    Op = _round_up(O, LANE)
    if Op != O:
        w2p = jnp.pad(w2, ((0, Op - O), (0, 0)))
        b2p = jnp.pad(b2, (0, Op - O))
    else:
        w2p, b2p = w2, b2

    gamma2 = gamma.reshape(1, H).astype(jnp.float32)
    beta2 = beta.reshape(1, H).astype(jnp.float32)
    b2_2 = b2p.reshape(1, Op).astype(jnp.float32)

    # Scoped-VMEM request sized from the actual (double-buffered) tiles + headroom,
    # clamped well under the v7x physical budget (64 MiB).
    bpe_x = jnp.dtype(x.dtype).itemsize
    vmem_need = 2 * (
        Np * D * bpe_x                                       # x block (resident)
        + tile_h * D * jnp.dtype(w1.dtype).itemsize          # w1 tile (streamed)
        + 2 * tile_h * 4                                     # gamma / beta tiles
        + Op * tile_h * jnp.dtype(w2p.dtype).itemsize        # w2 tile (streamed)
        + Op * 4                                             # bias (resident)
        + Np * Op * bpe_x                                    # output block
    ) + Np * Op * 4                                          # f32 accumulator scratch
    vmem_limit = int(min(max(2 * vmem_need, 16 << 20), 48 << 20))

    grid_spec = pltpu.PrefetchScalarGridSpec(
        num_scalar_prefetch=0,
        grid=(n_h,),  # H is the trailing reduction axis
        in_specs=[
            pl.BlockSpec((Np, D), lambda h: (0, 0)),       # x: resident across H tiles
            pl.BlockSpec((tile_h, D), lambda h: (h, 0)),   # w1 tile (streamed over H)
            pl.BlockSpec((1, tile_h), lambda h: (0, h)),   # gamma tile
            pl.BlockSpec((1, tile_h), lambda h: (0, h)),   # beta tile
            pl.BlockSpec((Op, tile_h), lambda h: (0, h)),  # w2 tile (streamed over H)
            pl.BlockSpec((1, Op), lambda h: (0, 0)),       # bias: resident
        ],
        out_specs=pl.BlockSpec((Np, Op), lambda h: (0, 0)),  # resident output block
        scratch_shapes=[pltpu.VMEM((Np, Op), jnp.float32)],
    )

    out_padded = pl.pallas_call(
        functools.partial(_mlp_kernel, inv_n=1.0 / N),
        out_shape=jax.ShapeDtypeStruct((Np, Op), x.dtype),
        grid_spec=grid_spec,
        compiler_params=pltpu.CompilerParams(
            dimension_semantics=("arbitrary",),
            vmem_limit_bytes=vmem_limit,
        ),
    )(xp, w1, gamma2, beta2, w2p, b2_2)

    # TODO(synk): for very large batches, additionally tile N (megacore "parallel"
    # axis) and carry BN sum / sum-of-squares accumulators across N tiles; here the
    # full batch stays resident in VMEM.
    return out_padded[:N, :O]


def reference_forward(x, w1, gamma, beta, w2, b2):
    """Pure-JAX reference using the same bf16-matmul / f32-statistics convention."""
    h = lax.dot_general(x.astype(jnp.bfloat16), w1.astype(jnp.bfloat16),
                        (((1,), (1,)), ((), ())), preferred_element_type=jnp.float32)
    mean = jnp.mean(h, axis=0, keepdims=True)
    var = jnp.mean(h * h, axis=0, keepdims=True) - mean * mean
    hn = (h - mean) * lax.rsqrt(var + BN_EPS) * gamma + beta
    hr = jnp.maximum(hn, 0.0)
    out = lax.dot_general(hr.astype(jnp.bfloat16), w2.astype(jnp.bfloat16),
                          (((1,), (1,)), ((), ())), preferred_element_type=jnp.float32)
    return out + b2


if __name__ == "__main__":
    # Small shapes consistent with MLP(input_dim, hidden_size, output_dim).
    # H=256 with tile_h=128 exercises the multi-step H reduction/accumulator path;
    # N=6 exercises batch padding to the 8-sublane grain; O=64 exercises the
    # lane-padding-to-128 path.
    N, D, H, O = 6, 32, 256, 64

    key = jax.random.PRNGKey(0)
    kx, kw1, kw2, kb2 = jax.random.split(key, 4)

    x = jax.random.normal(kx, (N, D), dtype=jnp.float32)

    bound1 = 1.0 / (D ** 0.5)
    w1 = jax.random.uniform(kw1, (H, D), minval=-bound1, maxval=bound1,
                            dtype=jnp.float32)                 # Linear(D->H), no bias
    gamma = jnp.ones((H,), dtype=jnp.float32)                  # BatchNorm1d weight
    beta = jnp.zeros((H,), dtype=jnp.float32)                  # BatchNorm1d bias
    bound2 = 1.0 / (H ** 0.5)
    w2 = jax.random.uniform(kw2, (O, H), minval=-bound2, maxval=bound2,
                            dtype=jnp.float32)                 # Linear(H->O)
    b2 = jax.random.uniform(kb2, (O,), minval=-bound2, maxval=bound2,
                            dtype=jnp.float32)

    out = mlp_forward(x, w1, gamma, beta, w2, b2, tile_h=128)
    out = jax.block_until_ready(out)

    ref = reference_forward(x, w1, gamma, beta, w2, b2)
    assert out.shape == (N, O)
    assert jnp.allclose(out, ref, atol=2e-2, rtol=2e-2), "mismatch vs reference"

    print("KERNEL_OK")
</pallas_src>

<mosaic_0001>
module attributes {stable_mosaic.version = 11 : i64} {
  func.func @_mlp_kernel(%arg0: i32, %arg1: memref<8x32xf32, #tpu.memory_space<vmem>>, %arg2: memref<128x32xf32, #tpu.memory_space<vmem>>, %arg3: memref<1x128xf32, #tpu.memory_space<vmem>>, %arg4: memref<1x128xf32, #tpu.memory_space<vmem>>, %arg5: memref<128x128xf32, #tpu.memory_space<vmem>>, %arg6: memref<1x128xf32, #tpu.memory_space<vmem>>, %arg7: memref<8x128xf32, #tpu.memory_space<vmem>>, %arg8: memref<8x128xf32, #tpu.memory_space<vmem>>) attributes {dimension_semantics = [#tpu.dimension_semantics<arbitrary>], iteration_bounds = array<i64: 2>, scalar_prefetch = 0 : i64, scratch_operands = 1 : i64, tpu.core_type = #tpu.core_type<tc>, window_params = [{pipeline_mode = #tpu.pipeline_mode<synchronous>, transform_indices = @transform_0, window_bounds = array<i64: 8, 32>}, {transform_indices = @transform_1, window_bounds = array<i64: 128, 32>}, {transform_indices = @transform_2, window_bounds = array<i64: 1, 128>}, {transform_indices = @transform_3, window_bounds = array<i64: 1, 128>}, {transform_indices = @transform_4, window_bounds = array<i64: 128, 128>}, {pipeline_mode = #tpu.pipeline_mode<synchronous>, transform_indices = @transform_5, window_bounds = array<i64: 1, 128>}, {pipeline_mode = #tpu.pipeline_mode<synchronous>, transform_indices = @transform_6, window_bounds = array<i64: 8, 128>}]} {
    %c0 = arith.constant 0 : index
    %c0_0 = arith.constant 0 : index
    %0 = vector.load %arg1[%c0, %c0_0] : memref<8x32xf32, #tpu.memory_space<vmem>>, vector<8x32xf32>
    %1 = arith.truncf %0 : vector<8x32xf32> to vector<8x32xbf16>
    %c0_1 = arith.constant 0 : index
    %c0_2 = arith.constant 0 : index
    %2 = vector.load %arg2[%c0_1, %c0_2] : memref<128x32xf32, #tpu.memory_space<vmem>>, vector<128x32xf32>
    %3 = arith.truncf %2 : vector<128x32xf32> to vector<128x32xbf16>
    %cst = arith.constant dense<0.000000e+00> : vector<8x128xf32>
    %4 = tpu.matmul %1, %3, %cst {dimension_numbers = #tpu.dot_dimension_numbers<[1], [1], [0], [0], [0, 0, 1, 0], [], []>} : vector<8x32xbf16>, vector<128x32xbf16>, vector<8x128xf32> -> vector<8x128xf32>
    %cst_3 = arith.constant dense<0.000000e+00> : vector<128xf32>
    %5 = vector.multi_reduction <add>, %4, %cst_3 [0] : vector<8x128xf32> to vector<128xf32>
    %6 = vector.shape_cast %5 : vector<128xf32> to vector<1x128xf32>
    %cst_4 = arith.constant 0.166666672 : f32
    %7 = vector.broadcast %cst_4 : f32 to vector<1x128xf32>
    %8 = arith.mulf %6, %7 : vector<1x128xf32>
    %9 = arith.mulf %4, %4 : vector<8x128xf32>
    %cst_5 = arith.constant dense<0.000000e+00> : vector<128xf32>
    %10 = vector.multi_reduction <add>, %9, %cst_5 [0] : vector<8x128xf32> to vector<128xf32>
    %11 = vector.shape_cast %10 : vector<128xf32> to vector<1x128xf32>
    %cst_6 = arith.constant 0.166666672 : f32
    %12 = vector.broadcast %cst_6 : f32 to vector<1x128xf32>
    %13 = arith.mulf %11, %12 : vector<1x128xf32>
    %14 = arith.mulf %8, %8 : vector<1x128xf32>
    %15 = arith.subf %13, %14 : vector<1x128xf32>
    %c0_7 = arith.constant 0 : index
    %c0_8 = arith.constant 0 : index
    %16 = vector.load %arg3[%c0_7, %c0_8] : memref<1x128xf32, #tpu.memory_space<vmem>>, vector<1x128xf32>
    %cst_9 = arith.constant 9.99999974E-6 : f32
    %17 = vector.broadcast %cst_9 : f32 to vector<1x128xf32>
    %18 = arith.addf %15, %17 : vector<1x128xf32>
    %19 = math.rsqrt %18 : vector<1x128xf32>
    %20 = arith.mulf %16, %19 : vector<1x128xf32>
    %c0_10 = arith.constant 0 : index
    %c0_11 = arith.constant 0 : index
    %21 = vector.load %arg4[%c0_10, %c0_11] : memref<1x128xf32, #tpu.memory_space<vmem>>, vector<1x128xf32>
    %22 = arith.mulf %8, %20 : vector<1x128xf32>
    %23 = arith.subf %21, %22 : vector<1x128xf32>
    %24 = vector.broadcast %20 : vector<1x128xf32> to vector<8x128xf32>
    %25 = arith.mulf %4, %24 : vector<8x128xf32>
    %26 = vector.broadcast %23 : vector<1x128xf32> to vector<8x128xf32>
    %27 = arith.addf %25, %26 : vector<8x128xf32>
    %cst_12 = arith.constant 0.000000e+00 : f32
    %28 = vector.broadcast %cst_12 : f32 to vector<8x128xf32>
    %29 = arith.maximumf %27, %28 : vector<8x128xf32>
    %30 = arith.truncf %29 : vector<8x128xf32> to vector<8x128xbf16>
    %c0_13 = arith.constant 0 : index
    %c0_14 = arith.constant 0 : index
    %31 = vector.load %arg5[%c0_13, %c0_14] : memref<128x128xf32, #tpu.memory_space<vmem>>, vector<128x128xf32>
    %32 = arith.truncf %31 : vector<128x128xf32> to vector<128x128xbf16>
    %cst_15 = arith.constant dense<0.000000e+00> : vector<8x128xf32>
    %33 = tpu.matmul %30, %32, %cst_15 {dimension_numbers = #tpu.dot_dimension_numbers<[1], [1], [0], [0], [0, 0, 1, 0], [], []>} : vector<8x128xbf16>, vector<128x128xbf16>, vector<8x128xf32> -> vector<8x128xf32>
    %c0_i32 = arith.constant 0 : i32
    %34 = arith.cmpi eq, %arg0, %c0_i32 : i32
    %35 = arith.extui %34 : i1 to i32
    %c0_i32_16 = arith.constant 0 : i32
    %36 = arith.cmpi ne, %35, %c0_i32_16 : i32
    scf.if %36 {
      %c0_22 = arith.constant 0 : index
      %c0_23 = arith.constant 0 : index
      %43 = vector.load %arg6[%c0_22, %c0_23] : memref<1x128xf32, #tpu.memory_space<vmem>>, vector<1x128xf32>
      %44 = vector.shape_cast %43 : vector<1x128xf32> to vector<1x128xf32>
      %45 = vector.broadcast %44 : vector<1x128xf32> to vector<8x128xf32>
      %c0_24 = arith.constant 0 : index
      %c0_25 = arith.constant 0 : index
      %46 = vector.load %arg8[%c0_24, %c0_25] : memref<8x128xf32, #tpu.memory_space<vmem>>, vector<8x128xf32>
      tpu.vector_store %arg8[%c0_24, %c0_25], %45 {strides = array<i32>} : memref<8x128xf32, #tpu.memory_space<vmem>>, vector<8x128xf32>,
    } else {
    }
    %c0_17 = arith.constant 0 : index
    %c0_18 = arith.constant 0 : index
    %37 = vector.load %arg8[%c0_17, %c0_18] : memref<8x128xf32, #tpu.memory_space<vmem>>, vector<8x128xf32>
    %38 = arith.addf %37, %33 : vector<8x128xf32>
    %c0_19 = arith.constant 0 : index
    %c0_20 = arith.constant 0 : index
    %39 = vector.load %arg8[%c0_19, %c0_20] : memref<8x128xf32, #tpu.memory_space<vmem>>, vector<8x128xf32>
    tpu.vector_store %arg8[%c0_19, %c0_20], %38 {strides = array<i32>} : memref<8x128xf32, #tpu.memory_space<vmem>>, vector<8x128xf32>,
    %c1_i32 = arith.constant 1 : i32
    %40 = arith.cmpi eq, %arg0, %c1_i32 : i32
    %41 = arith.extui %40 : i1 to i32
    %c0_i32_21 = arith.constant 0 : i32
    %42 = arith.cmpi ne, %41, %c0_i32_21 : i32
    scf.if %42 {
      %c0_22 = arith.constant 0 : index
      %c0_23 = arith.constant 0 : index
      %43 = vector.load %arg8[%c0_22, %c0_23] : memref<8x128xf32, #tpu.memory_space<vmem>>, vector<8x128xf32>
      %c0_24 = arith.constant 0 : index
      %c0_25 = arith.constant 0 : index
      %44 = vector.load %arg7[%c0_24, %c0_25] : memref<8x128xf32, #tpu.memory_space<vmem>>, vector<8x128xf32>
      tpu.vector_store %arg7[%c0_24, %c0_25], %43 {strides = array<i32>} : memref<8x128xf32, #tpu.memory_space<vmem>>, vector<8x128xf32>,
    } else {
    }
    return
  }
  func.func @transform_0(%arg0: i32) -> (i32, i32) {
    %c0_i32 = arith.constant 0 : i32
    %c0_i32_0 = arith.constant 0 : i32
    %c0_i32_1 = arith.constant 0 : i32
    return %c0_i32, %c0_i32_0 : i32, i32
  }
  func.func @transform_1(%arg0: i32) -> (i32, i32) {
    %c0_i32 = arith.constant 0 : i32
    %c0_i32_0 = arith.constant 0 : i32
    return %arg0, %c0_i32 : i32, i32
  }
  func.func @transform_2(%arg0: i32) -> (i32, i32) {
    %c0_i32 = arith.constant 0 : i32
    %c0_i32_0 = arith.constant 0 : i32
    return %c0_i32, %arg0 : i32, i32
  }
  func.func @transform_3(%arg0: i32) -> (i32, i32) {
    %c0_i32 = arith.constant 0 : i32
    %c0_i32_0 = arith.constant 0 : i32
    return %c0_i32, %arg0 : i32, i32
  }
  func.func @transform_4(%arg0: i32) -> (i32, i32) {
    %c0_i32 = arith.constant 0 : i32
    %c0_i32_0 = arith.constant 0 : i32
    return %c0_i32, %arg0 : i32, i32
  }
  func.func @transform_5(%arg0: i32) -> (i32, i32) {
    %c0_i32 = arith.constant 0 : i32
    %c0_i32_0 = arith.constant 0 : i32
    %c0_i32_1 = arith.constant 0 : i32
    return %c0_i32, %c0_i32_0 : i32, i32
  }
  func.func @transform_6(%arg0: i32) -> (i32, i32) {
    %c0_i32 = arith.constant 0 : i32
    %c0_i32_0 = arith.constant 0 : i32
    %c0_i32_1 = arith.constant 0 : i32
    return %c0_i32, %c0_i32_0 : i32, i32
  }
}

</mosaic_0001>

<bundles_post_ra>
// kernel: mlp_forward.1
= control target key start
LH: loop header
LB: loop body
LE: loop exit
PB: predicated region body
PF: predicated region fallthrough
CT: control target
= control target key end

     0   :  { %11 = vsyncpa [#allocation5], 0  ;;  %s774_s21 = smov 0   ;;  %s776_s22 = smov 0   ;;  %s910_s0 = inlined_call_operand.vmem [shape: f32[8,32], index: 0, kind: input, shape index: {}]   ;;  %s911_s1 = inlined_call_operand.vmem [shape: f32[256,32], index: 1, kind: input, shape index: {}]   ;;  %s912_s2 = inlined_call_operand.vmem [shape: f32[1,256], index: 2, kind: input, shape index: {}]   ;;  %s913_s3 = inlined_call_operand.vmem [shape: f32[1,256], index: 3, kind: input, shape index: {}]   ;;  %s914_s4 = inlined_call_operand.vmem [shape: f32[128,256], index: 4, kind: input, shape index: {}]   ;;  %s915_s5 = inlined_call_operand.vmem [shape: f32[1,128], index: 5, kind: input, shape index: {}]   ;;  %s916_s6 = inlined_call_operand.hbm [shape: f32[8,128], index: 6, kind: output, shape index: {}]  }
   0x1   :  { %s778_s23 = smov 0  }
   0x2 LB: > { %s790_s24 = sadd.s32 4294967295, %s736_s23   ;;  %s793_s25 = sadd.s32 1, %s736_s23   ;;  %s736_s23 = sphi %s778_s23, %s919_s23   ;;  %s732_s22 = sphi %s776_s22, %s918_s22   ;;  %s728_s21 = sphi %s774_s21, %s917_s21  }
   0x3   : > { %s120_s26 = ssub.s32 %s736_s23, %s793_s25  ;;  %s123_s27 = sadd.s32 1, %s732_s22 }
   0x4   : > { %p121_p0 = scmp.eq.s32.totalorder %s120_s26, 0  ;;  %p130_p1 = scmp.ne.s32.totalorder %s732_s22, %s728_s21 }
   0x5   : > { %p131_p2 = scmp.eq.s32.totalorder %s736_s23, 0  ;;  %p634_p4 = scmp.ge.s32.totalorder %s736_s23, 2 }
   0x6   : > { %s802_s28 = scalar_select %p121_p0, %s732_s22, %s123_s27  }
   0x7   : > { %p132_p3 = por %p131_p2, %p130_p1  ;;  %204 = sbr.rel (%p634_p4) target bundleno = 32 (0x20), region = 24 }
   0xc   : > { %228 = sbr.rel (!%p132_p3) target bundleno = 32 (0x20), region = 40  ;;  %s230_s29 = sand.u32 (%p132_p3), 1, %s732_s22  }
   0xd   : > { %s636_s30 = sshll.u32 (%p132_p3), %s736_s23, 3  ;;  %s635_s7 = sshll.u32 (%p132_p3), %s230_s29, 7 }
   0xe   : > { %s810_s10 = scalar_lea.vmem (%p132_p3), %s914_s4, %s636_s30  ;;  %s232_s11 = scalar_lea.vmem (%p132_p3), [#allocation3], %s635_s7 }
   0xf   : > { %v293_v0 = vld [vmem:[%s810_s10] sm:$0xff] (%p132_p3)  ;;  %v295_v1 = vld [vmem:[%s810_s10 + $0x10] sm:$0xff] (%p132_p3) }
  0x10   : > { %v297_v2 = vld [vmem:[%s810_s10 + $0x20] sm:$0xff] (%p132_p3)  ;;  %294 = vst [vmem:[%s232_s11] sm:$0xff] (%p132_p3), %v293_v0  ;;  %v299_v3 = vld [vmem:[%s810_s10 + $0x30] sm:$0xff] (%p132_p3) }
  0x11   : > { %296 = vst [vmem:[%s232_s11 + $0x8] sm:$0xff] %v295_v1  ;;  %v301_v4 = vld [vmem:[%s810_s10 + $0x40] sm:$0xff]  ;;  %v303_v5 = vld [vmem:[%s810_s10 + $0x50] sm:$0xff] }
  0x12   : > { %298 = vst [vmem:[%s232_s11 + $0x10] sm:$0xff] %v297_v2  ;;  %v305_v6 = vld [vmem:[%s810_s10 + $0x60] sm:$0xff]  ;;  %v307_v7 = vld [vmem:[%s810_s10 + $0x70] sm:$0xff] }
  0x13   : > { %300 = vst [vmem:[%s232_s11 + $0x18] sm:$0xff] %v299_v3  ;;  %v309_v8 = vld [vmem:[%s810_s10 + $0x80] sm:$0xff]  ;;  %v311_v9 = vld [vmem:[%s810_s10 + $0x90] sm:$0xff] }
  0x14   : > { %302 = vst [vmem:[%s232_s11 + $0x20] sm:$0xff] %v301_v4  ;;  %v313_v10 = vld [vmem:[%s810_s10 + $0xa0] sm:$0xff]  ;;  %v315_v11 = vld [vmem:[%s810_s10 + $0xb0] sm:$0xff] }
  0x15   : > { %304 = vst [vmem:[%s232_s11 + $0x28] sm:$0xff] %v303_v5  ;;  %v317_v12 = vld [vmem:[%s810_s10 + $0xc0] sm:$0xff]  ;;  %v319_v13 = vld [vmem:[%s810_s10 + $0xd0] sm:$0xff] }
  0x16   : > { %306 = vst [vmem:[%s232_s11 + $0x30] sm:$0xff] %v305_v6  ;;  %v321_v14 = vld [vmem:[%s810_s10 + $0xe0] sm:$0xff]  ;;  %v323_v15 = vld [vmem:[%s810_s10 + $0xf0] sm:$0xff] }
  0x17   : > { %308 = vst [vmem:[%s232_s11 + $0x38] sm:$0xff] %v307_v7 }
  0x18   : > { %310 = vst [vmem:[%s232_s11 + $0x40] sm:$0xff] %v309_v8 }
  0x19   : > { %312 = vst [vmem:[%s232_s11 + $0x48] sm:$0xff] %v311_v9 }
  0x1a   : > { %314 = vst [vmem:[%s232_s11 + $0x50] sm:$0xff] %v313_v10 }
  0x1b   : > { %316 = vst [vmem:[%s232_s11 + $0x58] sm:$0xff] %v315_v11 }
  0x1c   : > { %318 = vst [vmem:[%s232_s11 + $0x60] sm:$0xff] %v317_v12 }
  0x1d   : > { %320 = vst [vmem:[%s232_s11 + $0x68] sm:$0xff] %v319_v13 }
  0x1e   : > { %322 = vst [vmem:[%s232_s11 + $0x70] sm:$0xff] %v321_v14 }
  0x1f   : > { %324 = vst [vmem:[%s232_s11 + $0x78] sm:$0xff] %v323_v15 }
  0x20 PF: > { %p637_p5 = scmp.ge.s32.totalorder %s736_s23, 1  ;;  %p329_p6 = scmp.lt.s32.totalorder %s736_s23, 3 }
  0x22   : > { %p330_p7 = pnand %p637_p5, %p329_p6 }
  0x23   : > { %s639_s12 = sshll.u32 (!%p330_p7), %s790_s24, 4  ;;  %s336_s17 = sand.u32 (!%p330_p7), 1, %s728_s21  }
  0x24   : > { %333 = sbr.rel (%p330_p7) target bundleno = 448 (0x1c0), region = 78  ;;  %p372_p8 = scmp.lt.s32.totalorder (!%p330_p7), %s639_s12, 31 }
  0x25   : > { %s638_s18 = sshll.u32 (!%p330_p7), %s336_s17, 7  ;;  %p377_p9 = scmp.lt.s32.totalorder (!%p330_p7), %s790_s24, 1 }
  0x26   : > { %s854_s19 = scalar_lea.vmem (!%p330_p7), [#allocation3], %s638_s18  ;;  %p642_p10 = scmp.ne.s32.totalorder (!%p330_p7), %s790_s24, 0 }
  0x29   : > { %s921_s12 = smov (!%p372_p8, %s639_s12), 31  ;;  %vm409_vm0 = vcmask 261120   ;;  %v507_v38 = vld [vmem:[%s854_s19 + $0x70] sm:$0xff]  ;;  %v508_v39 = vld [vmem:[%s854_s19 + $0x78] sm:$0xff]  ;;  %v505_v42 = vld [vmem:[%s854_s19 + $0x60] sm:$0xff] }
  0x2a   : > { %s640_s13 = sshll.u32 %s921_s12, 3  ;;  %v516_v40 = vpack.c.bf16 %v508_v39, %v507_v38  ;;  %v506_v43 = vld [vmem:[%s854_s19 + $0x68] sm:$0xff]  ;;  %v383_v54 = vld [vmem:[%s910_s0] sm:$0xff]  ;;  %v503_v56 = vld [vmem:[%s854_s19 + $0x50] sm:$0xff] }
  0x2b   : > { %s834_s16 = scalar_lea.vmem %s911_s1, %s640_s13  ;;  %v515_v47 = vpack.c.bf16 %v506_v43, %v505_v42  ;;  %v384_v55 = vpack.c.bf16 %v383_v54, %v383_v54  ;;  %v504_v57 = vld [vmem:[%s854_s19 + $0x58] sm:$0xff]  ;;  %v501_v59 = vld [vmem:[%s854_s19 + $0x40] sm:$0xff]  ;;  %v502_v60 = vld [vmem:[%s854_s19 + $0x48] sm:$0xff] }
  0x2c   : > { %v399_v16 = vld [vmem:[%s834_s16 + $0x70] sm:$0xff]  ;;  %v400_v17 = vld [vmem:[%s834_s16 + $0x78] sm:$0xff]  ;;  %v397_v19 = vld [vmem:[%s834_s16 + $0x60] sm:$0xff]  ;;  %517 = vmatpush.bf16.xpose.msra.mxu1 %v516_v40  ;;  %v514_v58 = vpack.c.bf16 %v504_v57, %v503_v56  ;;  %v513_v61 = vpack.c.bf16 %v502_v60, %v501_v59  ;;  %s378_s23 = scalar_select %p377_p9, %s790_s24, 1 }
  0x2d   : > { %v408_v18 = vpack.c.bf16 %v400_v17, %v399_v16  ;;  %v398_v20 = vld [vmem:[%s834_s16 + $0x68] sm:$0xff]  ;;  %v395_v24 = vld [vmem:[%s834_s16 + $0x50] sm:$0xff]  ;;  %v396_v25 = vld [vmem:[%s834_s16 + $0x58] sm:$0xff] }
  0x2e   : > { %v407_v22 = vpack.c.bf16 %v398_v20, %v397_v19  ;;  %v406_v26 = vpack.c.bf16 %v396_v25, %v395_v24  ;;  %v393_v28 = vld [vmem:[%s834_s16 + $0x40] sm:$0xff]  ;;  %v394_v29 = vld [vmem:[%s834_s16 + $0x48] sm:$0xff]  ;;  %v391_v32 = vld [vmem:[%s834_s16 + $0x30] sm:$0xff]  ;;  %s379_s29 = scalar_lea.vmem %s912_s2, %s378_s23  ;;  %s382_s8 = scalar_lea.vmem %s913_s3, %s378_s23 }
  0x2f   : > { %v435_v21 = vsel %vm409_vm0, %v408_v18, 0  ;;  %v405_v30 = vpack.c.bf16 %v394_v29, %v393_v28  ;;  %v392_v33 = vld [vmem:[%s834_s16 + $0x38] sm:$0xff]  ;;  %v389_v36 = vld [vmem:[%s834_s16 + $0x20] sm:$0xff]  ;;  %v390_v37 = vld [vmem:[%s834_s16 + $0x28] sm:$0xff] }
  0x30   : > { %437 = vmatpush.bf16.xpose.msra.mxu0 %v435_v21  ;;  %v432_v23 = vsel %vm409_vm0, %v407_v22, 0  ;;  %v429_v27 = vsel %vm409_vm0, %v406_v26, 0  ;;  %v404_v34 = vpack.c.bf16 %v392_v33, %v391_v32  ;;  %v403_v41 = vpack.c.bf16 %v390_v37, %v389_v36  ;;  %v387_v45 = vld [vmem:[%s834_s16 + $0x10] sm:$0xff]  ;;  %v388_v46 = vld [vmem:[%s834_s16 + $0x18] sm:$0xff]  ;;  %v385_v50 = vld [vmem:[%s834_s16] sm:$0xff] }
  0x31   : > { %v426_v31 = vsel %vm409_vm0, %v405_v30, 0  ;;  %v402_v48 = vpack.c.bf16 %v388_v46, %v387_v45  ;;  %v386_v51 = vld [vmem:[%s834_s16 + $0x8] sm:$0xff]  ;;  %v499_v62 = vld [vmem:[%s854_s19 + $0x30] sm:$0xff]  ;;  %v500_v63 = vld [vmem:[%s854_s19 + $0x38] sm:$0xff] }
  0x32   : > { %v423_v35 = vsel %vm409_vm0, %v404_v34, 0  ;;  %v420_v44 = vsel %vm409_vm0, %v403_v41, 0  ;;  %v401_v52 = vpack.c.bf16 %v386_v51, %v385_v50  ;;  %v512_v0 = vpack.c.bf16 %v500_v63, %v499_v62  ;;  %v497_v1 = vld [vmem:[%s854_s19 + $0x20] sm:$0xff]  ;;  %v498_v2 = vld [vmem:[%s854_s19 + $0x28] sm:$0xff]  ;;  %v495_v4 = vld [vmem:[%s854_s19 + $0x10] sm:$0xff] }
  0x33   : > { %v417_v49 = vsel %vm409_vm0, %v402_v48, 0  ;;  %v511_v3 = vpack.c.bf16 %v498_v2, %v497_v1  ;;  %v496_v5 = vld [vmem:[%s854_s19 + $0x18] sm:$0xff]  ;;  %v493_v16 = vld [vmem:[%s854_s19] sm:$0xff]  ;;  %v494_v17 = vld [vmem:[%s854_s19 + $0x8] sm:$0xff] }
  0x34   : > { %518 = vmatpush.bf16.xpose.msra.mxu1 %v515_v47  ;;  %v414_v53 = vsel %vm409_vm0, %v401_v52, 0  ;;  %v510_v9 = vpack.c.bf16 %v496_v5, %v495_v4  ;;  %v509_v21 = vpack.c.bf16 %v494_v17, %v493_v16  ;;  %v480_v39 = vld [vmem:[%s382_s8] sm:$0x1] }
  0x38   : > { %438 = vmatpush.bf16.xpose.msra.mxu0 %v432_v23 }
  0x3c   : > { %519 = vmatpush.bf16.xpose.msra.mxu1 %v514_v58 }
  0x40   : > { %439 = vmatpush.bf16.xpose.msra.mxu0 %v429_v27 }
  0x44   : > { %520 = vmatpush.bf16.xpose.msra.mxu1 %v513_v61 }
  0x48   : > { %440 = vmatpush.bf16.xpose.msra.mxu0 %v426_v31 }
  0x4c   : > { %521 = vmatpush.bf16.xpose.msra.mxu1 %v512_v0 }
  0x50   : > { %441 = vmatpush.bf16.xpose.msra.mxu0 %v423_v35  ;;  %v467_v35 = vld [vmem:[%s379_s29] sm:$0x1] }
  0x54   : > { %522 = vmatpush.bf16.xpose.msra.mxu1 %v511_v3 }
  0x58   : > { %442 = vmatpush.bf16.xpose.msra.mxu0 %v420_v44 }
  0x5c   : > { %523 = vmatpush.bf16.xpose.msra.mxu1 %v510_v9 }
  0x60   : > { %443 = vmatpush.bf16.xpose.msra.mxu0 %v417_v49 }
  0x64   : > { %524 = vmatpush.bf16.xpose.msra.mxu1 %v509_v21 }
  0x68   : > { %444 = vmatpush.bf16.xpose.msra.mxu0 %v414_v53 }
  0x6f   : > { %641 = vmatmul.msk.bf16.vlgmr.msra.gmra.mxu0 %vm409_vm0, %v384_v55 }
  0xec   : > { %v446_v6 = vpop.f32.mrf.mxu0 }
  0xed   : > { %v450_v7 = vrot.slane %v446_v6, 4  ;;  %v457_v8 = vmul.f32 %v446_v6, %v446_v6 }
  0xef   : > { %v451_v10 = vadd.f32 %v450_v7, %v446_v6  ;;  %v458_v11 = vrot.slane %v457_v8, 4 }
  0xf1   : > { %v452_v12 = vrot.slane %v451_v10, 2  ;;  %v459_v13 = vadd.f32 %v458_v11, %v457_v8 }
  0xf3   : > { %v453_v14 = vadd.f32 %v452_v12, %v451_v10  ;;  %v460_v15 = vrot.slane %v459_v13, 2 }
  0xf4   : > { %v448_v18 = vpop.f32.mrf.mxu0 }
  0xf5   : > { %v454_v19 = vrot.slane %v453_v14, 1  ;;  %v461_v20 = vadd.f32 %v460_v15, %v459_v13 }
  0xf7   : > { %v462_v22 = vrot.slane %v461_v20, 1  ;;  %v455_v23 = vadd.f32 %v454_v19, %v453_v14 }
  0xf9   : > { %v463_v24 = vadd.f32 %v462_v22, %v461_v20  ;;  %v456_v25 = vmul.f32 0.16666667, %v455_v23 }
  0xfb   : > { %v464_v26 = vmul.f32 0.16666667, %v463_v24  ;;  %v465_v27 = vmul.f32 %v456_v25, %v456_v25 }
  0xfd   : > { %v466_v28 = vsub.f32 %v464_v26, %v465_v27 }
  0xff   : > { %v468_v29 = vadd.f32 1e-05, %v466_v28 }
 0x101   : > { %679 = vrsqrt.f32 %v468_v29  ;;  %vm475_vm2 = vweird.f32 %v468_v29 }
 0x107   : > { %v680_v30 = vpop.eup %679 }
 0x108   : > { %v470_v31 = vmul.f32 %v680_v30, %v468_v29  ;;  %vm476_vm1 = vweird.f32 %v680_v30 }
 0x109   : > { %vm477_vm3 = vmor %vm475_vm2, %vm476_vm1 }
 0x10a   : > { %v471_v32 = vmul.f32 %v680_v30, %v470_v31 }
 0x10c   : > { %v472_v33 = vmul.f32 0.5, %v471_v32 }
 0x10e   : > { %v473_v34 = vsub.f32 1.5, %v472_v33 }
 0x110   : > { %v474_v36 = vmul.f32 %v680_v30, %v473_v34 }
 0x112   : > { %v478_v37 = vsel %vm477_vm3, %v680_v30, %v474_v36 }
 0x113   : > { %v479_v38 = vmul.f32 %v478_v37, %v467_v35 }
 0x115   : > { %v481_v40 = vmul.f32 %v479_v38, %v456_v25  ;;  %v484_v41 = vperm.slane %v479_v38, 0 }
 0x117   : > { %v482_v42 = vsub.f32 %v480_v39, %v481_v40  ;;  %v486_v43 = vmul.f32 %v484_v41, %v446_v6 }
 0x119   : > { %v488_v44 = vperm.slane %v482_v42, 0 }
 0x11b   : > { %v490_v45 = vadd.f32 %v488_v44, %v486_v43 }
 0x11d   : > { %v491_v46 = vmax.f32 %v490_v45, 0.0 }
 0x11f   : > { %v492_v47 = vpack.c.bf16 %v491_v46, %v491_v46 }
 0x121   : > { %525 = vmatmul.bf16.vlgmr.msra.gmra.mxu1 %v492_v47 }
 0x19e   : > { %v526_v48 = vpop.f32.mrf.mxu1 }
 0x1a2   : > { %533 = sbr.rel (%p642_p10) target bundleno = 425 (0x1a9), region = 86 }
 0x1a6   : > { %v528_v49 = vpop.f32.mrf.mxu1 }
 0x1a7   : > { %v681_v50 = vld [vmem:[%s915_s5] ss:$0 sm:$0xff] }
 0x1a8   : > { %538 = vst [vmem:[#allocation2] sm:$0xff] %v681_v50 }
 0x1a9 PF: > { %p643_p11 = scmp.ne.s32.totalorder %s790_s24, 1 }
 0x1ae   : > { %545 = sbr.rel (%p643_p11) target bundleno = 443 (0x1bb), region = 90 }
 0x1af   : > { %v539_v51 = vld [vmem:[#allocation2] sm:$0xff] }
 0x1b0   : > { %v540_v52 = vadd.f32 %v539_v51, %v526_v48 }
 0x1b2   : > { %541 = vst [vmem:[#allocation2] sm:$0xff] %v540_v52 }
 0x1b9   : > { %v546_v53 = vld [vmem:[#allocation2] sm:$0xff] }
 0x1ba   : > { %547 = vst [vmem:[#allocation4] sm:$0xff] %v546_v53 }
 0x1bb PF: > { %p652_p12 = scmp.eq.s32.totalorder %s790_s24, 1  ;;  %s738_s11 = smov [#allocation4]  }
 0x1bc   : > { %s554_s12 = sshll.u32 %s738_s11, 4  ;;  %s556_s15 = sshll.u32 %s916_s6, 4  ;;  %s555_s12 = int_to_ptr.vmem [resolvable:$true] %s554_s12  ;;  %s557_s15 = int_to_ptr.hbm [resolvable:$true] %s556_s15 }
 0x1bd   : > { %649 = dma.vmem_to_hbm [thread:$0]  (%p652_p12), %s555_s12, 128, %s557_s15, [#allocation5]  }
 0x1be   : > { %723 = dma.done.wait (%p652_p12), [#allocation5], 128  }
 0x1bf   : > { %725 = vsyncadd (%p652_p12), [#allocation5], 4294967168 }
 0x1c0 PF: > { %p14_p13 = scmp.ge.s32.totalorder %s793_s25, 4   ;;  %s917_s21 = smov %s732_s22 }
 0x1c1   : > { %s918_s22 = smov %s802_s28  ;;  %s919_s23 = smov %s793_s25 }
 0x1c2   :  { %16 = sbr.rel (!%p14_p13) target bundleno = 2 (0x2), region = 131 }
 0x1c7   :  { %570 = vsyncpa [#allocation5], 1 }
 0x1c8   :  { %572 = vsyncpa [#allocation5 + $0x1], 1 }

</bundles_post_ra>
